<compile_context>
chip_gen: v7x
topology: tpu7x:2x2x1
jax: 0.10.0
libtpu: 0.0.40
codegen_flags: <defaults>
</compile_context>

<pallas_src>
import math

import jax
import jax.numpy as jnp
from jax.experimental import pallas as pl
from jax.experimental.pallas import tpu as pltpu


def _round_up(x, m):
    return (x + m - 1) // m * m


def _vmem_limit_bytes():
    """Generation-aware VMEM limit (v5e/v6e: 128 MiB physical, v7x: 64 MiB)."""
    phys = 64 * 1024 * 1024
    try:
        info = pltpu.get_tpu_info()
        phys = int(getattr(info, "vmem_capacity_bytes", phys)) or phys
    except Exception:
        pass
    # leave headroom under the physical capacity for compiler-internal scratch
    return min(int(phys * 3 // 4), 96 * 1024 * 1024)


# --------------------------------------------------------------------------
# Streaming kernel: sum over the (grouped) sequence axis, matmul on last tile.
# --------------------------------------------------------------------------
def _sum_matmul_kernel(emb_ref, w_ref, b_ref, o_ref, acc_ref):
    # emb_ref: [TB, TSG, GE] (stream dtype)   w_ref: [GE, O_pad] f32 (W.T/S,
    # replicated g times)   b_ref: [1, O_pad]   o_ref: [TB, O_pad]
    # acc_ref: [TB, GE] f32 scratch (resident across the seq grid axis)
    j = pl.program_id(1)

    @pl.when(j == 0)
    def _init():
        acc_ref[...] = jnp.zeros_like(acc_ref)

    acc_ref[...] += jnp.sum(emb_ref[...], axis=1, dtype=jnp.float32)

    @pl.when(j == pl.num_programs(1) - 1)
    def _finalize():
        out = jnp.dot(acc_ref[...], w_ref[...], preferred_element_type=jnp.float32)
        o_ref[...] = (out + b_ref[...]).astype(o_ref.dtype)


# --------------------------------------------------------------------------
# Fused-gather kernel: manual row DMAs from the HBM table (rows >= 512 B).
# --------------------------------------------------------------------------
def _make_fused_gather_kernel(tb, ts, n_inflight):
    n_rows = tb * ts

    def kernel(ids_ref, tbl_ref, w_ref, b_ref, o_ref, stage_ref, sems, acc_ref):
        # ids_ref  : SMEM [B_pad, S_pad] int32 (scalar-prefetched)
        # tbl_ref  : HBM  [V+1, E] (memory_space=pl.ANY), last row is all-zero
        # stage_ref: VMEM [TB, TS, E] staging for the gathered rows
        # acc_ref  : VMEM [TB, E] f32 accumulator
        i = pl.program_id(0)
        j = pl.program_id(1)

        @pl.when(j == 0)
        def _init():
            acc_ref[...] = jnp.zeros_like(acc_ref)

        b0 = i * tb
        s0 = j * ts

        def issue(r):
            b = r // ts
            s = r - b * ts
            tok = ids_ref[b0 + b, s0 + s]
            pltpu.make_async_copy(
                tbl_ref.at[tok], stage_ref.at[b, s], sems.at[r % n_inflight]
            ).start()

        @pl.loop(0, min(n_inflight, n_rows))
        def _prime(r):
            issue(r)

        @pl.loop(0, n_rows)
        def _gather(r):
            b = r // ts
            s = r - b * ts
            # wait for row r (same shape / same semaphore as the start above)
            pltpu.make_async_copy(
                tbl_ref.at[0], stage_ref.at[b, s], sems.at[r % n_inflight]
            ).wait()

            @pl.when(r + n_inflight < n_rows)
            def _prefetch():
                issue(r + n_inflight)

        acc_ref[...] += jnp.sum(stage_ref[...], axis=1, dtype=jnp.float32)

        @pl.when(j == pl.num_programs(1) - 1)
        def _finalize():
            out = jnp.dot(acc_ref[...], w_ref[...], preferred_element_type=jnp.float32)
            o_ref[...] = (out + b_ref[...]).astype(o_ref.dtype)

    return kernel


# --------------------------------------------------------------------------
# Wrapper
# --------------------------------------------------------------------------
def fasttext_forward(x_tokens, embedding_table, fc_weight, fc_bias, *,
                     stream_dtype=jnp.bfloat16, batch_tile=None, seq_tile=None,
                     fuse_gather="auto"):
    """FastText forward.

    x_tokens: [seq_len, batch] int ids; embedding_table: [vocab, emb];
    fc_weight: [out_dim, emb]; fc_bias: [out_dim].  Returns [batch, out_dim] f32.
    `seq_tile` is in sequence positions; `fuse_gather` in {"auto", True, False}.
    """
    S, B = x_tokens.shape
    V, E = embedding_table.shape
    O = fc_weight.shape[0]
    itemsize = jnp.dtype(stream_dtype).itemsize
    vmem_limit = _vmem_limit_bytes()

    # ---- shared prep ------------------------------------------------------
    O_pad = _round_up(O, 128)                       # lane-dense output stores
    # Append an all-zero row; padded ids (seq and batch padding) point at it,
    # so the kernel needs no masking and the divisor stays the true S.
    table_ext = jnp.concatenate(
        [embedding_table, jnp.zeros((1, E), embedding_table.dtype)], axis=0
    ).astype(stream_dtype)
    zero_id = V

    # batch tiling: small tile -> minimal batch padding and >=2 "parallel"
    # grid blocks (v7x megacore) as soon as B > 8.
    if batch_tile is None:
        batch_tile = 64 if B >= 512 else 8
    TB = _round_up(batch_tile, 8)
    B_pad = _round_up(B, TB)

    # fc weight: transpose + fold the 1/S mean scale + pad classes to 128.
    w_t = jnp.pad((fc_weight.T / float(S)).astype(jnp.float32),
                  ((0, 0), (0, O_pad - O)))          # [E, O_pad]
    b_p = jnp.pad(fc_bias.astype(jnp.float32),
                  (0, O_pad - O)).reshape(1, O_pad)  # [1, O_pad]

    use_fused = (fuse_gather is True) or (
        fuse_gather == "auto"
        and E * itemsize >= 512                       # per-row DMA is worthwhile
        and B_pad * _round_up(S, 8) * 4 <= 256 * 1024  # ids fit comfortably in SMEM
    )

    if use_fused:
        # ---------------- fused in-kernel gather path -----------------------
        E_vmem = _round_up(E, 128)
        stage_budget = min(4 * 1024 * 1024, vmem_limit // 8)
        ts_max = max(8, (stage_budget // (TB * E_vmem * itemsize)) // 8 * 8)
        TS = seq_tile if seq_tile is not None else ts_max
        if TS >= S:
            TS = S                                   # single seq tile, no padding
        else:
            TS = max(8, min(TS, ts_max) // 8 * 8)
        S_pad = _round_up(S, TS)

        ids = jnp.pad(x_tokens.astype(jnp.int32).T,
                      ((0, B_pad - B), (0, S_pad - S)),
                      constant_values=zero_id)       # [B_pad, S_pad]

        n_inflight = min(8, TB * TS)
        kernel = _make_fused_gather_kernel(TB, TS, n_inflight)
        grid = (B_pad // TB, S_pad // TS)

        cost = pl.CostEstimate(
            flops=B_pad * S_pad * E + 2 * B_pad * E * O_pad,
            transcendentals=0,
            bytes_accessed=B_pad * S_pad * (E * itemsize + 4)
                           + (E * O_pad + O_pad + B_pad * O_pad) * 4)

        out = pl.pallas_call(
            kernel,
            out_shape=jax.ShapeDtypeStruct((B_pad, O_pad), jnp.float32),
            grid_spec=pltpu.PrefetchScalarGridSpec(
                num_scalar_prefetch=1,               # ids -> SMEM
                grid=grid,
                in_specs=[
                    pl.BlockSpec(memory_space=pl.ANY),               # table in HBM
                    pl.BlockSpec((E, O_pad), lambda i, j, ids_ref: (0, 0)),
                    pl.BlockSpec((1, O_pad), lambda i, j, ids_ref: (0, 0)),
                ],
                out_specs=pl.BlockSpec((TB, O_pad), lambda i, j, ids_ref: (i, 0)),
                scratch_shapes=[
                    pltpu.VMEM((TB, TS, E), stream_dtype),           # gather staging
                    pltpu.SemaphoreType.DMA((n_inflight,)),
                    pltpu.VMEM((TB, E), jnp.float32),                # accumulator
                ],
            ),
            compiler_params=pltpu.CompilerParams(
                dimension_semantics=("parallel", "arbitrary"),
                vmem_limit_bytes=vmem_limit),
            cost_estimate=cost,
        )(ids, table_ext, w_t, b_p)
        return out[:B, :O]

    # ---------------- streaming path (gather in XLA, reduce in kernel) ------
    # Lane density for small emb dims: view [B, S, E] as [B, S/g, g*E] with
    # g*E a multiple of 128 (pure reshape of a contiguous array -> no extra
    # HBM bytes); replicate the weight g times so no un-fold is needed.
    g = 128 // math.gcd(E, 128)
    if g > 16:
        g = 1                                        # accept lane padding in VMEM only
    GE = g * E
    GE_vmem = _round_up(GE, 128)                     # width actually held in VMEM
    sub = 16 if itemsize == 2 else 8                 # sublane granularity

    SG = -(-S // g)                                  # number of g-sized groups
    # per-buffer budget from the real (lane-padded) footprint
    fixed = (2 * GE_vmem * O_pad + 2 * 8 * O_pad + 2 * TB * O_pad
             + TB * GE_vmem) * 4                     # w/b/out double buffers + f32 acc
    emb_budget = max((vmem_limit - fixed) // 2 - (2 << 20), 1 << 20)
    tsg_max = max(sub, (emb_budget // (TB * GE_vmem * itemsize)) // sub * sub)

    TSG = max(1, seq_tile // g) if seq_tile is not None else tsg_max
    if TSG >= SG:
        TSG = SG                                     # single seq tile -> full dim
    else:
        TSG = max(sub, min(TSG, tsg_max) // sub * sub)
    SG_pad = _round_up(SG, TSG)
    S_pad = SG_pad * g

    ids = jnp.pad(x_tokens.astype(jnp.int32).T,
                  ((0, B_pad - B), (0, S_pad - S)),
                  constant_values=zero_id)           # [B_pad, S_pad]
    # TODO(synk): rows < 512 B keep the gather in XLA (a per-row DMA gather is
    # DMA-issue bound there); rows >= 512 B take the fused path above instead.
    embedded = table_ext[ids].reshape(B_pad, SG_pad, GE)   # free view reshape

    w_rep = jnp.tile(w_t, (g, 1))                    # [GE, O_pad]

    grid = (B_pad // TB, SG_pad // TSG)
    cost = pl.CostEstimate(
        flops=B_pad * S_pad * E + 2 * B_pad * GE * O_pad,
        transcendentals=0,
        bytes_accessed=B_pad * SG_pad * GE * itemsize
                       + (GE * O_pad + O_pad + B_pad * O_pad) * 4)

    # TODO(synk): single-buffer the constant-index w/b blocks and triple-buffer
    # the emb block on v7x via pipeline_mode=pl.Buffered(k) once profiled.
    out = pl.pallas_call(
        _sum_matmul_kernel,
        out_shape=jax.ShapeDtypeStruct((B_pad, O_pad), jnp.float32),
        grid_spec=pltpu.PrefetchScalarGridSpec(
            num_scalar_prefetch=0,
            grid=grid,
            in_specs=[
                pl.BlockSpec((TB, TSG, GE), lambda i, j: (i, j, 0)),
                # constant-index blocks: fetched once and kept resident
                pl.BlockSpec((GE, O_pad), lambda i, j: (0, 0)),
                pl.BlockSpec((1, O_pad), lambda i, j: (0, 0)),
            ],
            out_specs=pl.BlockSpec((TB, O_pad), lambda i, j: (i, 0)),
            scratch_shapes=[pltpu.VMEM((TB, GE), jnp.float32)],
        ),
        compiler_params=pltpu.CompilerParams(
            dimension_semantics=("parallel", "arbitrary"),
            vmem_limit_bytes=vmem_limit),
        cost_estimate=cost,
    )(embedded, w_rep, b_p)
    return out[:B, :O]


if __name__ == "__main__":
    key = jax.random.PRNGKey(0)
    k_emb, k_w, k_b, k_x, k_x2, k_x3 = jax.random.split(key, 6)

    # ---- Config 1: small shapes from the module's forward (bf16 streaming).
    V1, E1, O1, S1, B1 = 50, 32, 8, 12, 2
    table1 = jax.random.normal(k_emb, (V1, E1), jnp.float32)
    w1 = jax.random.normal(k_w, (O1, E1), jnp.float32) * 0.1
    b1 = jax.random.normal(k_b, (O1,), jnp.float32) * 0.1
    x1 = jax.random.randint(k_x, (S1, B1), 0, V1, jnp.int32)

    out1 = jax.block_until_ready(fasttext_forward(x1, table1, w1, b1))
    t1 = table1.astype(jnp.bfloat16).astype(jnp.float32)   # kernel streams bf16
    ref1 = t1[x1].mean(axis=0) @ w1.T + b1
    assert out1.shape == (B1, O1)
    assert jnp.allclose(out1, ref1, atol=3e-4, rtol=3e-4)

    # ---- Config 2: multi-tile accumulation over both grid axes, batch
    # padding (20 -> 24), padded final seq tile, f32 streaming.
    S2, B2, E2, O2, V2 = 300, 20, 64, 5, 100
    table2 = jax.random.normal(k_emb, (V2, E2), jnp.float32)
    w2 = jax.random.normal(k_w, (O2, E2), jnp.float32) * 0.1
    b2 = jax.random.normal(k_b, (O2,), jnp.float32) * 0.1
    x2 = jax.random.randint(k_x2, (S2, B2), 0, V2, jnp.int32)

    out2 = jax.block_until_ready(
        fasttext_forward(x2, table2, w2, b2, stream_dtype=jnp.float32,
                         batch_tile=8, seq_tile=128))
    ref2 = table2[x2].mean(axis=0) @ w2.T + b2
    assert out2.shape == (B2, O2)
    assert jnp.allclose(out2, ref2, atol=1e-4, rtol=1e-4)

    # ---- Config 3: fused in-kernel gather (512 B rows -> manual row DMAs),
    # exercises batch padding rows pointing at the appended zero row.
    S3, B3, E3, O3, V3 = 20, 3, 128, 6, 64
    table3 = jax.random.normal(k_emb, (V3, E3), jnp.float32)
    w3 = jax.random.normal(k_w, (O3, E3), jnp.float32) * 0.1
    b3 = jax.random.normal(k_b, (O3,), jnp.float32) * 0.1
    x3 = jax.random.randint(k_x3, (S3, B3), 0, V3, jnp.int32)

    out3 = jax.block_until_ready(
        fasttext_forward(x3, table3, w3, b3, stream_dtype=jnp.float32,
                         fuse_gather=True))
    ref3 = table3[x3].mean(axis=0) @ w3.T + b3
    assert out3.shape == (B3, O3)
    assert jnp.allclose(out3, ref3, atol=1e-4, rtol=1e-4)

    print("KERNEL_OK")
</pallas_src>

<mosaic_0001>
module attributes {stable_mosaic.version = 11 : i64} {
  func.func @_sum_matmul_kernel(%arg0: i32, %arg1: i32, %arg2: memref<8x3x128xbf16, #tpu.memory_space<vmem>>, %arg3: memref<128x128xf32, #tpu.memory_space<vmem>>, %arg4: memref<1x128xf32, #tpu.memory_space<vmem>>, %arg5: memref<8x128xf32, #tpu.memory_space<vmem>>, %arg6: memref<8x128xf32, #tpu.memory_space<vmem>>) attributes {dimension_semantics = [#tpu.dimension_semantics<parallel>, #tpu.dimension_semantics<arbitrary>], iteration_bounds = array<i64: 1, 1>, scalar_prefetch = 0 : i64, scratch_operands = 1 : i64, tpu.core_type = #tpu.core_type<tc>, window_params = [{transform_indices = @transform_0, window_bounds = array<i64: 8, 3, 128>}, {pipeline_mode = #tpu.pipeline_mode<synchronous>, transform_indices = @transform_1, window_bounds = array<i64: 128, 128>}, {pipeline_mode = #tpu.pipeline_mode<synchronous>, transform_indices = @transform_2, window_bounds = array<i64: 1, 128>}, {transform_indices = @transform_3, window_bounds = array<i64: 8, 128>}]} {
    %c0_i32 = arith.constant 0 : i32
    %0 = arith.cmpi eq, %arg1, %c0_i32 : i32
    %1 = arith.extui %0 : i1 to i32
    %c0_i32_0 = arith.constant 0 : i32
    %2 = arith.cmpi ne, %1, %c0_i32_0 : i32
    scf.if %2 {
      %cst_9 = arith.constant 0.000000e+00 : f32
      %12 = vector.broadcast %cst_9 : f32 to vector<8x128xf32>
      %c0_10 = arith.constant 0 : index
      %c0_11 = arith.constant 0 : index
      %13 = vector.load %arg6[%c0_10, %c0_11] : memref<8x128xf32, #tpu.memory_space<vmem>>, vector<8x128xf32>
      tpu.vector_store %arg6[%c0_10, %c0_11], %12 {strides = array<i32>} : memref<8x128xf32, #tpu.memory_space<vmem>>, vector<8x128xf32>,
    } else {
    }
    %c0 = arith.constant 0 : index
    %c0_1 = arith.constant 0 : index
    %3 = vector.load %arg6[%c0, %c0_1] : memref<8x128xf32, #tpu.memory_space<vmem>>, vector<8x128xf32>
    %c0_2 = arith.constant 0 : index
    %c0_3 = arith.constant 0 : index
    %c0_4 = arith.constant 0 : index
    %4 = vector.load %arg2[%c0_2, %c0_3, %c0_4] : memref<8x3x128xbf16, #tpu.memory_space<vmem>>, vector<8x3x128xbf16>
    %5 = arith.extf %4 : vector<8x3x128xbf16> to vector<8x3x128xf32>
    %cst = arith.constant dense<0.000000e+00> : vector<8x128xf32>
    %6 = vector.multi_reduction <add>, %5, %cst [1] : vector<8x3x128xf32> to vector<8x128xf32>
    %7 = arith.addf %3, %6 : vector<8x128xf32>
    %c0_5 = arith.constant 0 : index
    %c0_6 = arith.constant 0 : index
    %8 = vector.load %arg6[%c0_5, %c0_6] : memref<8x128xf32, #tpu.memory_space<vmem>>, vector<8x128xf32>
    tpu.vector_store %arg6[%c0_5, %c0_6], %7 {strides = array<i32>} : memref<8x128xf32, #tpu.memory_space<vmem>>, vector<8x128xf32>,
    %c0_i32_7 = arith.constant 0 : i32
    %9 = arith.cmpi eq, %arg1, %c0_i32_7 : i32
    %10 = arith.extui %9 : i1 to i32
    %c0_i32_8 = arith.constant 0 : i32
    %11 = arith.cmpi ne, %10, %c0_i32_8 : i32
    scf.if %11 {
      %c0_9 = arith.constant 0 : index
      %c0_10 = arith.constant 0 : index
      %12 = vector.load %arg6[%c0_9, %c0_10] : memref<8x128xf32, #tpu.memory_space<vmem>>, vector<8x128xf32>
      %c0_11 = arith.constant 0 : index
      %c0_12 = arith.constant 0 : index
      %13 = vector.load %arg3[%c0_11, %c0_12] : memref<128x128xf32, #tpu.memory_space<vmem>>, vector<128x128xf32>
      %cst_13 = arith.constant dense<0.000000e+00> : vector<8x128xf32>
      %14 = tpu.matmul %12, %13, %cst_13 {dimension_numbers = #tpu.dot_dimension_numbers<[1], [0], [0], [1], [0, 0, 1, 1], [], []>} : vector<8x128xf32>, vector<128x128xf32>, vector<8x128xf32> -> vector<8x128xf32>
      %c0_14 = arith.constant 0 : index
      %c0_15 = arith.constant 0 : index
      %15 = vector.load %arg4[%c0_14, %c0_15] : memref<1x128xf32, #tpu.memory_space<vmem>>, vector<1x128xf32>
      %16 = vector.broadcast %15 : vector<1x128xf32> to vector<8x128xf32>
      %17 = arith.addf %14, %16 : vector<8x128xf32>
      %c0_16 = arith.constant 0 : index
      %c0_17 = arith.constant 0 : index
      %18 = vector.load %arg5[%c0_16, %c0_17] : memref<8x128xf32, #tpu.memory_space<vmem>>, vector<8x128xf32>
      tpu.vector_store %arg5[%c0_16, %c0_17], %17 {strides = array<i32>} : memref<8x128xf32, #tpu.memory_space<vmem>>, vector<8x128xf32>,
    } else {
    }
    return
  }
  func.func @transform_0(%arg0: i32, %arg1: i32) -> (i32, i32, i32) {
    %c0_i32 = arith.constant 0 : i32
    %c0_i32_0 = arith.constant 0 : i32
    return %arg0, %arg1, %c0_i32 : i32, i32, i32
  }
  func.func @transform_1(%arg0: i32, %arg1: i32) -> (i32, i32) {
    %c0_i32 = arith.constant 0 : i32
    %c0_i32_0 = arith.constant 0 : i32
    %c0_i32_1 = arith.constant 0 : i32
    return %c0_i32, %c0_i32_0 : i32, i32
  }
  func.func @transform_2(%arg0: i32, %arg1: i32) -> (i32, i32) {
    %c0_i32 = arith.constant 0 : i32
    %c0_i32_0 = arith.constant 0 : i32
    %c0_i32_1 = arith.constant 0 : i32
    return %c0_i32, %c0_i32_0 : i32, i32
  }
  func.func @transform_3(%arg0: i32, %arg1: i32) -> (i32, i32) {
    %c0_i32 = arith.constant 0 : i32
    %c0_i32_0 = arith.constant 0 : i32
    return %arg0, %c0_i32 : i32, i32
  }
}

</mosaic_0001>

<bundles_post_ra>
// kernel: tpu_custom_call.1
= control target key start
LH: loop header
LB: loop body
LE: loop exit
PB: predicated region body
PF: predicated region fallthrough
CT: control target
= control target key end

     0   :  { %8 = vsyncpa [#allocation4], 0  ;;  %s492_s0 = inlined_call_operand.vmem [shape: bf16[8,3,128], index: 0, kind: input, shape index: {}]   ;;  %s493_s1 = inlined_call_operand.hbm [shape: f32[128,128], index: 1, kind: input, shape index: {}]   ;;  %s494_s2 = inlined_call_operand.vmem [shape: f32[1,128], index: 2, kind: input, shape index: {}]   ;;  %s495_s3 = inlined_call_operand.hbm [shape: f32[8,128], index: 3, kind: output, shape index: {}]  }
   0x1   :  { %9 = vsyncpa [#allocation5], 0  ;;  %s378_s12 = smov [#allocation3]   ;;  %s330_s16 = scalar_lea.hbm %s493_s1, 2048 }
   0x2   :  { %s17_s13 = sshll.u32 %s378_s12, 4  ;;  %p331_p0 = scmp.ne.s32.totalorder %s493_s1, %s330_s16  ;;  %s18_s13 = int_to_ptr.vmem [resolvable:$true] %s17_s13 }
   0x3   :  { %p334_p1 = scmp.lt.u32.totalorder %s330_s16, %s493_s1 }
   0x5   :  { %p336_p2 = pnand %p334_p1, %p331_p0 }
   0x7   :  { %339 = shalt.err (!%p336_p2)
}
   0x8   :  { %s340_s21 = scalar_lea.vmem %s18_s13, 2048  ;;  %p345_p4 = scmp.lt.s32.totalorder %s18_s13, %s18_s13 }
   0x9   :  { %p341_p3 = scmp.ne.s32.totalorder %s18_s13, %s340_s21  ;;  %p346_p5 = scmp.lt.s32.totalorder %s340_s21, %s340_s21 }
   0xb   :  { %p347_p6 = por %p346_p5, %p345_p4 }
   0xd   :  { %p348_p7 = pnand %p347_p6, %p341_p3 }
   0xf   :  { %351 = shalt.err (!%p348_p7)
}
  0x10   :  { %s379_s22 = smov 128   ;;  %s380_s23 = smov 8  }
  0x11   :  { %23 = dma.hbm_to_vmem [thread:$0]  %s493_s1, 2048, %s18_s13, [#allocation4], %s379_s22, %s379_s22, %s380_s23  }
  0x12   :  { %374 = dma.done.wait [#allocation4], 2048  }
  0x13   :  { %375 = vsyncadd [#allocation4], 4294965248  ;;  %v381_v0 = vmov 0.0|0.0   ;;  %vm382_vm0 = vmmov 0   ;;  %v383_v1 = vmov 0.0   ;;  %v137_v2 = vld [vmem:[#allocation3] sm:$0xff] }
  0x14   :  { %299 = vmatprep.subr.bf16.mxu0 %v381_v0  ;;  %296 = vmatprep.mubr.msk.f32.mxu0 %vm382_vm0, %v383_v1  ;;  %v138_v3 = vld [vmem:[#allocation3 + $0x8] sm:$0xff]  ;;  %v139_v4 = vld [vmem:[#allocation3 + $0x10] sm:$0xff]  ;;  %v140_v6 = vld [vmem:[#allocation3 + $0x18] sm:$0xff]  ;;  %vm51_vm1 = vcmask 1042432   ;;  %vm116_vm2 = vcmask 1041409   ;;  %vm118_vm3 = vcmask 1042434  }
  0x15   :  { %v300_v5 = vpack.c.bf16 %v138_v3, %v137_v2  ;;  %v141_v7 = vld [vmem:[#allocation3 + $0x20] sm:$0xff]  ;;  %v142_v8 = vld [vmem:[#allocation3 + $0x28] sm:$0xff]  ;;  %v143_v9 = vld [vmem:[#allocation3 + $0x30] sm:$0xff]  ;;  %v303_v10 = vpack.c.bf16 %v140_v6, %v139_v4  ;;  %vm120_vm4 = vcmask 1043459   ;;  %vm122_vm5 = vcmask 1044484   ;;  %s384_s15 = smov [#allocation6]  }
  0x16   :  { %v144_v11 = vld [vmem:[#allocation3 + $0x38] sm:$0xff]  ;;  %v418_v12 = vld [vmem:[#allocation3 + $0x40] sm:$0xff]  ;;  %v420_v13 = vld [vmem:[#allocation3 + $0x48] sm:$0xff]  ;;  %v306_v16 = vpack.c.bf16 %v142_v8, %v141_v7  ;;  %vm124_vm6 = vcmask 1045509   ;;  %vm126_vm7 = vcmask 1046534   ;;  %vm128_vm8 = vcmask 1047559  }
  0x17   :  { %301 = vmatpush3.bf16.msra.mxu0 %v300_v5  ;;  %v423_v14 = vld [vmem:[#allocation3 + $0x50] sm:$0xff]  ;;  %v425_v15 = vld [vmem:[#allocation3 + $0x58] sm:$0xff]  ;;  %v309_v19 = vpack.c.bf16 %v144_v11, %v143_v9  ;;  %v312_v20 = vpack.c.bf16 %v420_v13, %v418_v12  ;;  %s237_s16 = sshll.u32 %s384_s15, 4  ;;  %s238_s16 = int_to_ptr.vmem [resolvable:$true] %s237_s16 }
  0x18   :  { %302 = vmatprep.subr.bf16.mxu0 %v381_v0  ;;  %v35_v17 = vld [vmem:[%s492_s0] sm:$0x3]  ;;  %v36_v18 = vld [vmem:[%s492_s0 + $0x2] sm:$0x3]  ;;  %v37_v21 = vld [vmem:[%s492_s0 + $0x4] sm:$0x3]  ;;  %v315_v26 = vpack.c.bf16 %v425_v15, %v423_v14  ;;  %p357_p9 = scmp.lt.s32.totalorder %s238_s16, %s238_s16 }
  0x19   :  { %v38_v22 = vld [vmem:[%s492_s0 + $0x6] sm:$0x3]  ;;  %v39_v23 = vld [vmem:[%s492_s0 + $0x8] sm:$0x3]  ;;  %v43_v24 = vunpack.c.l.bf16 %v35_v17  ;;  %v44_v25 = vunpack.c.l.bf16 %v36_v18  ;;  %v40_v27 = vld [vmem:[%s492_s0 + $0xa] sm:$0x3]  ;;  %v45_v30 = vunpack.c.l.bf16 %v37_v21 }
  0x1a   :  { %v41_v28 = vld [vmem:[%s492_s0 + $0xc] sm:$0x3]  ;;  %v42_v29 = vld [vmem:[%s492_s0 + $0xe] sm:$0x3]  ;;  %v46_v31 = vunpack.c.l.bf16 %v38_v22  ;;  %v47_v32 = vunpack.c.l.bf16 %v39_v23  ;;  %v48_v33 = vunpack.c.l.bf16 %v40_v27  ;;  %v149_v23 = vld [vmem:[#allocation3 + $0x60] sm:$0xff]  ;;  %s352_s17 = scalar_lea.vmem %s238_s16, 128 }
  0x1b   :  { %304 = vmatpush3.bf16.msra.mxu0 %v303_v10  ;;  %v49_v34 = vunpack.c.l.bf16 %v41_v28  ;;  %v50_v35 = vunpack.c.l.bf16 %v42_v29  ;;  %v52_v36 = vsel %vm51_vm1, %v43_v24, 0.0  ;;  %v59_v38 = vsel %vm51_vm1, %v44_v25, 0.0  ;;  %v150_v24 = vld [vmem:[#allocation3 + $0x68] sm:$0xff]  ;;  %p353_p8 = scmp.ne.s32.totalorder %s238_s16, %s352_s17  ;;  %p358_p10 = scmp.lt.s32.totalorder %s352_s17, %s352_s17 }
  0x1c   :  { %305 = vmatprep.subr.bf16.mxu0 %v381_v0  ;;  %v53_v37 = vrot.slane %v52_v36, 4  ;;  %v66_v39 = vsel %vm51_vm1, %v45_v30, 0.0  ;;  %v73_v40 = vsel %vm51_vm1, %v46_v31, 0.0  ;;  %v60_v41 = vrot.slane %v59_v38, 4 }
  0x1d   :  { %v67_v42 = vrot.slane %v66_v39, 4  ;;  %v74_v43 = vrot.slane %v73_v40, 4  ;;  %v80_v44 = vsel %vm51_vm1, %v47_v32, 0.0  ;;  %v87_v47 = vsel %vm51_vm1, %v48_v33, 0.0  ;;  %p359_p11 = por %p358_p10, %p357_p9 }
  0x1e   :  { %v54_v45 = vadd.f32 %v53_v37, %v52_v36  ;;  %v81_v46 = vrot.slane %v80_v44, 4  ;;  %v94_v48 = vsel %vm51_vm1, %v49_v34, 0.0  ;;  %v61_v49 = vadd.f32 %v60_v41, %v59_v38  ;;  %v152_v36 = vld [vmem:[#allocation3 + $0x78] sm:$0xff] }
  0x1f   :  { %307 = vmatpush3.bf16.msra.mxu0 %v306_v16  ;;  %v68_v50 = vadd.f32 %v67_v42, %v66_v39  ;;  %v75_v51 = vadd.f32 %v74_v43, %v73_v40  ;;  %v88_v52 = vrot.slane %v87_v47, 4  ;;  %v95_v55 = vrot.slane %v94_v48, 4  ;;  %p360_p12 = pnand %p359_p11, %p353_p8 }
  0x20   :  { %308 = vmatprep.subr.bf16.mxu0 %v381_v0  ;;  %v55_v53 = vrot.slane %v54_v45, 2  ;;  %v82_v54 = vadd.f32 %v81_v46, %v80_v44  ;;  %v101_v56 = vsel %vm51_vm1, %v50_v35, 0.0  ;;  %v62_v57 = vrot.slane %v61_v49, 2  ;;  %v151_v35 = vld [vmem:[#allocation3 + $0x70] sm:$0xff] }
  0x21   :  { %v69_v58 = vrot.slane %v68_v50, 2  ;;  %v76_v59 = vrot.slane %v75_v51, 2  ;;  %v89_v60 = vadd.f32 %v88_v52, %v87_v47  ;;  %v96_v63 = vadd.f32 %v95_v55, %v94_v48 }
  0x22   :  { %v56_v61 = vadd.f32 %v55_v53, %v54_v45  ;;  %v83_v62 = vrot.slane %v82_v54, 2  ;;  %v102_v1 = vrot.slane %v101_v56, 4  ;;  %v63_v2 = vadd.f32 %v62_v57, %v61_v49 }
  0x23   :  { %310 = vmatpush3.bf16.msra.mxu0 %v309_v19  ;;  %v70_v3 = vadd.f32 %v69_v58, %v68_v50  ;;  %v77_v4 = vadd.f32 %v76_v59, %v75_v51  ;;  %v90_v5 = vrot.slane %v89_v60, 2  ;;  %v97_v8 = vrot.slane %v96_v63, 2 }
  0x24   :  { %311 = vmatprep.subr.bf16.mxu0 %v381_v0  ;;  %v57_v6 = vrot.slane %v56_v61, 1  ;;  %v84_v7 = vadd.f32 %v83_v62, %v82_v54  ;;  %v103_v9 = vadd.f32 %v102_v1, %v101_v56  ;;  %v64_v10 = vrot.slane %v63_v2, 1 }
  0x25   :  { %v71_v11 = vrot.slane %v70_v3, 1  ;;  %v78_v16 = vrot.slane %v77_v4, 1  ;;  %v91_v17 = vadd.f32 %v90_v5, %v89_v60  ;;  %v98_v21 = vadd.f32 %v97_v8, %v96_v63 }
  0x26   :  { %v58_v18 = vadd.f32 %v57_v6, %v56_v61  ;;  %v85_v19 = vrot.slane %v84_v7, 1  ;;  %v104_v22 = vrot.slane %v103_v9, 2  ;;  %v65_v25 = vadd.f32 %v64_v10, %v63_v2 }
  0x27   :  { %313 = vmatpush3.bf16.msra.mxu0 %v312_v20  ;;  %v72_v27 = vadd.f32 %v71_v11, %v70_v3  ;;  %v79_v28 = vadd.f32 %v78_v16, %v77_v4  ;;  %v92_v29 = vrot.slane %v91_v17, 1  ;;  %v99_v31 = vrot.slane %v98_v21, 1 }
  0x28   :  { %314 = vmatprep.subr.bf16.mxu0 %v381_v0  ;;  %v86_v30 = vadd.f32 %v85_v19, %v84_v7  ;;  %v105_v32 = vadd.f32 %v104_v22, %v103_v9  ;;  %v117_v12 = vsel %vm116_vm2, %v65_v25, %v58_v18  ;;  %v318_v13 = vpack.c.bf16 %v150_v24, %v149_v23 }
  0x29   :  { %v93_v33 = vadd.f32 %v92_v29, %v91_v17  ;;  %v119_v34 = vsel %vm118_vm3, %v72_v27, %v117_v12  ;;  %v100_v37 = vadd.f32 %v99_v31, %v98_v21  ;;  %v321_v41 = vpack.c.bf16 %v152_v36, %v151_v35 }
  0x2a   :  { %v106_v20 = vrot.slane %v105_v32, 1  ;;  %v121_v38 = vsel %vm120_vm4, %v79_v28, %v119_v34 }
  0x2b   :  { %316 = vmatpush3.bf16.msra.mxu0 %v315_v26  ;;  %v123_v39 = vsel %vm122_vm5, %v86_v30, %v121_v38  ;;  %v246_v26 = vld [vmem:[%s494_s2] ss:$0 sm:$0xff] }
  0x2c   :  { %317 = vmatprep.subr.bf16.mxu0 %v381_v0  ;;  %v125_v40 = vsel %vm124_vm6, %v93_v33, %v123_v39  ;;  %v107_v42 = vadd.f32 %v106_v20, %v105_v32 }
  0x2d   :  { %v127_v14 = vsel %vm126_vm7, %v100_v37, %v125_v40 }
  0x2e   :  { %v129_v15 = vsel %vm128_vm8, %v107_v42, %v127_v14 }
  0x2f   :  { %319 = vmatpush3.bf16.msra.mxu0 %v318_v13 }
  0x30   :  { %320 = vmatprep.subr.bf16.mxu0 %v381_v0 }
  0x33   :  { %322 = vmatpush3.bf16.msra.mxu0 %v321_v41 }
  0x36   :  { %297 = vmatmul.mubr.f32.vlgmr.msra.gmra.mrb[0].mxu0 %v129_v15 }
 0x109   :  { %v226_v43 = vpop.f32.mrb[0].mxu0 }
 0x10a   :  { %v227_v44 = vadd.f32 %v246_v26, %v226_v43  ;;  %v298_v45 = vpop.f32.mrb[1].mxu0 }
 0x10c   :  { %230 = vst [vmem:[#allocation6] sm:$0xff] %v227_v44 }
 0x10d   :  { %363 = shalt.err (!%p360_p12)
}
 0x10e   :  { %s364_s20 = scalar_lea.hbm %s495_s3, 128 }
 0x10f   :  { %p365_p13 = scmp.ne.s32.totalorder %s495_s3, %s364_s20  ;;  %p368_p0 = scmp.lt.u32.totalorder %s364_s20, %s495_s3 }
 0x111   :  { %p370_p1 = pnand %p368_p0, %p365_p13 }
 0x113   :  { %373 = shalt.err (!%p370_p1)
}
 0x114   :  { %240 = dma.vmem_to_hbm [thread:$0]  %s238_s16, 128, %s495_s3, [#allocation5]  }
 0x115   :  { %376 = dma.done.wait [#allocation5], 128  }
 0x116   :  { %377 = vsyncadd [#allocation5], 4294967168 }
 0x117   :  { %244 = vsyncpa [#allocation4], 1 }
 0x118   :  { %245 = vsyncpa [#allocation5], 1 }

</bundles_post_ra>
